<compile_context>
chip_gen: v7x
topology: tpu7x:2x2x1
jax: 0.10.0
libtpu: 0.0.40
codegen_flags: <defaults>
</compile_context>

<pallas_src>
import functools

import jax
import jax.numpy as jnp
import numpy as np
from jax.experimental import pallas as pl
from jax.experimental.pallas import tpu as pltpu


def _cla_kernel(x_ref, w_ref, b_ref, o_ref, *, heads, head_dim, eps, fast_matmul):
    # x_ref: (1, Bt, L, Fin) ; w_ref: (Fin, 3*HE) ; b_ref: (1, 3*HE) ; o_ref: (1, Bt, L*HE)
    _, Bt, L, Fin = x_ref.shape
    HE = heads * head_dim
    mm_dtype = jnp.bfloat16 if fast_matmul else jnp.float32

    # Fused Q|K|V projection: one MXU matmul, 3*HE lanes wide.
    x2 = x_ref[0].astype(jnp.float32).reshape(Bt * L, Fin)              # (Bt*L, Fin)
    qkv = jnp.dot(x2, w_ref[...], preferred_element_type=jnp.float32) + b_ref[...]

    q2 = qkv[:, :HE]
    k2 = qkv[:, HE:2 * HE]
    v2 = qkv[:, 2 * HE:]

    # Feature map elu(z)+1 == where(z>0, z+1, exp(z)); clamp exp arg (cheap insurance).
    Q = jnp.where(q2 > 0, q2 + 1.0, jnp.exp(jnp.minimum(q2, 0.0))).reshape(Bt, L, HE)
    K = jnp.where(k2 > 0, k2 + 1.0, jnp.exp(jnp.minimum(k2, 0.0))).reshape(Bt, L, HE)
    V = v2.reshape(Bt, L, HE)

    # Causal mask, built once and broadcast to the batched (Bt, L, L) shape.
    row = jax.lax.broadcasted_iota(jnp.int32, (L, L), 0)
    col = jax.lax.broadcasted_iota(jnp.int32, (L, L), 1)
    causal = jnp.broadcast_to((col <= row)[None, :, :], (Bt, L, L))

    head_outs = []
    for h in range(heads):                      # static, small H; matmuls batched over Bt
        sl = slice(h * head_dim, (h + 1) * head_dim)
        Qh = Q[:, :, sl].astype(mm_dtype)
        Kh = K[:, :, sl].astype(mm_dtype)
        Vh = V[:, :, sl].astype(mm_dtype)

        s = jnp.einsum('ble,bme->blm', Qh, Kh,
                       preferred_element_type=jnp.float32)              # (Bt, L, L) f32
        s = jnp.where(causal, s, 0.0)

        denom = jnp.sum(s, axis=-1, keepdims=True) + eps                # (Bt, L, 1) f32
        if fast_matmul:
            z = pl.reciprocal(denom, approx=True)                       # EUP vrcp
        else:
            z = 1.0 / denom

        num = jnp.einsum('blm,bme->ble', s.astype(mm_dtype), Vh,
                         preferred_element_type=jnp.float32)            # (Bt, L, E) f32
        head_outs.append(num * z)

    out = jnp.concatenate(head_outs, axis=-1)                           # (Bt, L, HE)
    # Lane-dense store: flatten (L, HE) -> L*HE so the last dim is a multiple of 128.
    o_ref[0] = out.reshape(Bt, L * HE).astype(o_ref.dtype)


def _pick_block_b(bn, max_block=64):
    """Largest divisor of bn <= max_block that leaves at least 2 grid steps (v7x 2-TC)."""
    if bn <= 1:
        return 1
    best = 1
    for cand in range(1, min(bn // 2, max_block) + 1):
        if bn % cand == 0:
            best = cand
    return best


def causal_linear_attention(x, wq, bq, wk, bk, wv, bv, *, heads, head_dim,
                            eps=1e-6, block_b=None, fast_matmul=False):
    batch, L, nodes, Fin = x.shape
    HE = heads * head_dim
    BN = batch * nodes

    if block_b is None:
        block_b = _pick_block_b(BN)
    assert BN % block_b == 0, "block_b must divide batch*nodes"
    G = BN // block_b

    # transpose(dim=1, -2): (batch, L, nodes, F) -> (batch, nodes, L, F); flatten & group.
    # TODO(synk): this swapaxes materializes an HBM copy of x; it could be folded into the
    # BlockSpec index_map (strided per-node DMA) if a profile shows it matters.
    x_flat = jnp.swapaxes(x, 1, 2).reshape(G, block_b, L, Fin)

    # Fused QKV parameters (weight prep, done once outside the kernel).
    w3 = jnp.concatenate([wq, wk, wv], axis=1)                          # (Fin, 3*HE)
    b3 = jnp.concatenate([bq, bk, bv], axis=1)                          # (1, 3*HE)

    kernel = functools.partial(_cla_kernel, heads=heads, head_dim=head_dim,
                               eps=eps, fast_matmul=fast_matmul)
    out = pl.pallas_call(
        kernel,
        out_shape=jax.ShapeDtypeStruct((G, block_b, L * HE), jnp.float32),
        grid=(G,),
        in_specs=[
            pl.BlockSpec((1, block_b, L, Fin), lambda g: (g, 0, 0, 0)),
            pl.BlockSpec((Fin, 3 * HE), lambda g: (0, 0)),
            pl.BlockSpec((1, 3 * HE), lambda g: (0, 0)),
        ],
        out_specs=pl.BlockSpec((1, block_b, L * HE), lambda g: (g, 0, 0)),
        compiler_params=pltpu.CompilerParams(dimension_semantics=("parallel",)),
    )(x_flat, w3, b3)

    # (G, Bt, L*HE) -> (batch, nodes, L, HE) is a pure reshape (no copy), then
    # transpose(dim=1, -2) back to (batch, L, nodes, HE).
    out = out.reshape(batch, nodes, L, HE)
    return jnp.swapaxes(out, 1, 2)


def _reference(x, wq, bq, wk, bk, wv, bv, *, heads, head_dim, eps=1e-6):
    """Pure-JAX reference matching the PyTorch forward semantics (f32 throughout)."""
    batch, L, nodes, Fin = x.shape
    xt = jnp.swapaxes(x, 1, 2)                                          # (b, n, L, F)
    q = xt @ wq + bq[0]
    k = xt @ wk + bk[0]
    v = xt @ wv + bv[0]
    q = q.reshape(batch, nodes, L, heads, head_dim)
    k = k.reshape(batch, nodes, L, heads, head_dim)
    v = v.reshape(batch, nodes, L, heads, head_dim)
    Q = jnp.where(q > 0, q + 1.0, jnp.exp(q))
    K = jnp.where(k > 0, k + 1.0, jnp.exp(k))
    A = jnp.einsum('bnlhe,bnmhe->bnhlm', Q, K)
    mask = jnp.tril(jnp.ones((L, L), dtype=bool))
    A = jnp.where(mask, A, 0.0)
    z = 1.0 / (A.sum(-1) + eps)                                         # (b, n, h, l)
    out = jnp.einsum('bnhlm,bnmhe->bnlhe', A, v)
    out = out * jnp.swapaxes(z, -1, -2)[..., None]                      # (b, n, l, h, e)
    out = out.reshape(batch, nodes, L, heads * head_dim)
    return jnp.swapaxes(out, 1, 2)


if __name__ == "__main__":
    batch, L, nodes = 2, 8, 4
    embed_dim, heads = 32, 4
    head_dim = embed_dim // heads
    qdim = embed_dim                                                    # qdim=kdim=vdim=embed_dim
    HE = heads * head_dim

    key = jax.random.PRNGKey(0)
    kx, kq, kk, kv, kbq, kbk, kbv = jax.random.split(key, 7)
    x = jax.random.normal(kx, (batch, L, nodes, qdim), dtype=jnp.float32)

    scale = 1.0 / np.sqrt(qdim)
    wq = jax.random.normal(kq, (qdim, HE), dtype=jnp.float32) * scale
    wk = jax.random.normal(kk, (qdim, HE), dtype=jnp.float32) * scale
    wv = jax.random.normal(kv, (qdim, HE), dtype=jnp.float32) * scale
    bq = jax.random.normal(kbq, (1, HE), dtype=jnp.float32) * 0.1
    bk = jax.random.normal(kbk, (1, HE), dtype=jnp.float32) * 0.1
    bv = jax.random.normal(kbv, (1, HE), dtype=jnp.float32) * 0.1

    ref = _reference(x, wq, bq, wk, bk, wv, bv, heads=heads, head_dim=head_dim)

    # Strict f32 path (bit-faithful to the PyTorch .float() forward).
    out = causal_linear_attention(x, wq, bq, wk, bk, wv, bv,
                                  heads=heads, head_dim=head_dim, fast_matmul=False)
    out = jax.block_until_ready(out)
    assert out.shape == (batch, L, nodes, HE) and out.dtype == jnp.float32
    np.testing.assert_allclose(np.asarray(out), np.asarray(ref), rtol=1e-3, atol=1e-3)

    # Fast path for v6e/v7x: bf16 MXU operands (f32 accumulation) + approx reciprocal.
    out_fast = causal_linear_attention(x, wq, bq, wk, bk, wv, bv,
                                       heads=heads, head_dim=head_dim, fast_matmul=True)
    out_fast = jax.block_until_ready(out_fast)
    np.testing.assert_allclose(np.asarray(out_fast), np.asarray(ref), rtol=2e-2, atol=2e-2)

    print("KERNEL_OK")
</pallas_src>

<mosaic_0001>
module attributes {stable_mosaic.version = 11 : i64} {
  func.func @_cla_kernel(%arg0: i32, %arg1: memref<1x4x8x32xf32, #tpu.memory_space<vmem>>, %arg2: memref<32x96xf32, #tpu.memory_space<vmem>>, %arg3: memref<1x96xf32, #tpu.memory_space<vmem>>, %arg4: memref<1x4x256xf32, #tpu.memory_space<vmem>>) attributes {dimension_semantics = [#tpu.dimension_semantics<parallel>], iteration_bounds = array<i64: 2>, scalar_prefetch = 0 : i64, scratch_operands = 0 : i64, tpu.core_type = #tpu.core_type<tc>, window_params = [{transform_indices = @transform_0, window_bounds = array<i64: 1, 4, 8, 32>}, {pipeline_mode = #tpu.pipeline_mode<synchronous>, transform_indices = @transform_1, window_bounds = array<i64: 32, 96>}, {pipeline_mode = #tpu.pipeline_mode<synchronous>, transform_indices = @transform_2, window_bounds = array<i64: 1, 96>}, {transform_indices = @transform_3, window_bounds = array<i64: 1, 4, 256>}]} {
    %c0 = arith.constant 0 : index
    %c0_0 = arith.constant 0 : index
    %c0_1 = arith.constant 0 : index
    %c0_2 = arith.constant 0 : index
    %0 = vector.load %arg1[%c0, %c0_0, %c0_1, %c0_2] : memref<1x4x8x32xf32, #tpu.memory_space<vmem>>, vector<1x4x8x32xf32>
    %1 = vector.shape_cast %0 : vector<1x4x8x32xf32> to vector<4x8x32xf32>
    %2 = vector.shape_cast %1 : vector<4x8x32xf32> to vector<32x32xf32>
    %c0_3 = arith.constant 0 : index
    %c0_4 = arith.constant 0 : index
    %3 = vector.load %arg2[%c0_3, %c0_4] : memref<32x96xf32, #tpu.memory_space<vmem>>, vector<32x96xf32>
    %cst = arith.constant dense<0.000000e+00> : vector<32x96xf32>
    %4 = tpu.matmul %2, %3, %cst {dimension_numbers = #tpu.dot_dimension_numbers<[1], [0], [0], [1], [0, 0, 1, 1], [], []>} : vector<32x32xf32>, vector<32x96xf32>, vector<32x96xf32> -> vector<32x96xf32>
    %c0_5 = arith.constant 0 : index
    %c0_6 = arith.constant 0 : index
    %5 = vector.load %arg3[%c0_5, %c0_6] : memref<1x96xf32, #tpu.memory_space<vmem>>, vector<1x96xf32>
    %6 = vector.broadcast %5 : vector<1x96xf32> to vector<32x96xf32>
    %7 = arith.addf %4, %6 : vector<32x96xf32>
    %8 = vector.extract_strided_slice %7 {offsets = [0, 0], sizes = [32, 32], strides = [1, 1]} : vector<32x96xf32> to vector<32x32xf32>
    %9 = vector.extract_strided_slice %7 {offsets = [0, 32], sizes = [32, 32], strides = [1, 1]} : vector<32x96xf32> to vector<32x32xf32>
    %10 = vector.extract_strided_slice %7 {offsets = [0, 64], sizes = [32, 32], strides = [1, 1]} : vector<32x96xf32> to vector<32x32xf32>
    %cst_7 = arith.constant 0.000000e+00 : f32
    %11 = vector.broadcast %cst_7 : f32 to vector<32x32xf32>
    %12 = arith.cmpf ogt, %8, %11 : vector<32x32xf32>
    %cst_8 = arith.constant 1.000000e+00 : f32
    %13 = vector.broadcast %cst_8 : f32 to vector<32x32xf32>
    %14 = arith.addf %8, %13 : vector<32x32xf32>
    %cst_9 = arith.constant 0.000000e+00 : f32
    %15 = vector.broadcast %cst_9 : f32 to vector<32x32xf32>
    %16 = arith.minimumf %8, %15 : vector<32x32xf32>
    %17 = math.exp %16 : vector<32x32xf32>
    %18 = arith.select %12, %14, %17 : vector<32x32xi1>, vector<32x32xf32>
    %19 = vector.shape_cast %18 : vector<32x32xf32> to vector<4x8x32xf32>
    %cst_10 = arith.constant 0.000000e+00 : f32
    %20 = vector.broadcast %cst_10 : f32 to vector<32x32xf32>
    %21 = arith.cmpf ogt, %9, %20 : vector<32x32xf32>
    %cst_11 = arith.constant 1.000000e+00 : f32
    %22 = vector.broadcast %cst_11 : f32 to vector<32x32xf32>
    %23 = arith.addf %9, %22 : vector<32x32xf32>
    %cst_12 = arith.constant 0.000000e+00 : f32
    %24 = vector.broadcast %cst_12 : f32 to vector<32x32xf32>
    %25 = arith.minimumf %9, %24 : vector<32x32xf32>
    %26 = math.exp %25 : vector<32x32xf32>
    %27 = arith.select %21, %23, %26 : vector<32x32xi1>, vector<32x32xf32>
    %28 = vector.shape_cast %27 : vector<32x32xf32> to vector<4x8x32xf32>
    %29 = vector.shape_cast %10 : vector<32x32xf32> to vector<4x8x32xf32>
    %30 = tpu.iota {dimensions = array<i32: 0>} : vector<8x8xi32>
    %31 = tpu.iota {dimensions = array<i32: 1>} : vector<8x8xi32>
    %32 = arith.cmpi sle, %31, %30 : vector<8x8xi32>
    %33 = vector.shape_cast %32 : vector<8x8xi1> to vector<1x8x8xi1>
    %34 = vector.shape_cast %33 : vector<1x8x8xi1> to vector<1x8x8xi1>
    %35 = vector.broadcast %34 : vector<1x8x8xi1> to vector<4x8x8xi1>
    %36 = vector.extract_strided_slice %19 {offsets = [0, 0, 0], sizes = [4, 8, 8], strides = [1, 1, 1]} : vector<4x8x32xf32> to vector<4x8x8xf32>
    %37 = vector.extract_strided_slice %28 {offsets = [0, 0, 0], sizes = [4, 8, 8], strides = [1, 1, 1]} : vector<4x8x32xf32> to vector<4x8x8xf32>
    %38 = vector.extract_strided_slice %29 {offsets = [0, 0, 0], sizes = [4, 8, 8], strides = [1, 1, 1]} : vector<4x8x32xf32> to vector<4x8x8xf32>
    "tpu.trace_start"() <{level = 10 : i32, message = "ble,bme->blm"}> : () -> ()
    %cst_13 = arith.constant dense<0.000000e+00> : vector<4x8x8xf32>
    %39 = tpu.matmul %36, %37, %cst_13 {dimension_numbers = #tpu.dot_dimension_numbers<[2], [2], [1], [1], [0, 0, 0, 1, 1, 1], [0], [0]>} : vector<4x8x8xf32>, vector<4x8x8xf32>, vector<4x8x8xf32> -> vector<4x8x8xf32>
    %cst_14 = arith.constant 0.000000e+00 : f32
    "tpu.trace_stop"() : () -> ()
    %40 = vector.broadcast %cst_14 : f32 to vector<4x8x8xf32>
    %41 = arith.select %35, %39, %40 : vector<4x8x8xi1>, vector<4x8x8xf32>
    %cst_15 = arith.constant dense<0.000000e+00> : vector<4x8xf32>
    %42 = vector.multi_reduction <add>, %41, %cst_15 [2] : vector<4x8x8xf32> to vector<4x8xf32>
    %43 = vector.shape_cast %42 : vector<4x8xf32> to vector<4x8x1xf32>
    %cst_16 = arith.constant 9.99999997E-7 : f32
    %44 = vector.broadcast %cst_16 : f32 to vector<4x8x1xf32>
    %45 = arith.addf %43, %44 : vector<4x8x1xf32>
    %cst_17 = arith.constant 1.000000e+00 : f32
    %46 = vector.broadcast %cst_17 : f32 to vector<4x8x1xf32>
    %47 = arith.divf %46, %45 : vector<4x8x1xf32>
    "tpu.trace_start"() <{level = 10 : i32, message = "blm,bme->ble"}> : () -> ()
    %cst_18 = arith.constant dense<0.000000e+00> : vector<4x8x8xf32>
    %48 = tpu.matmul %41, %38, %cst_18 {dimension_numbers = #tpu.dot_dimension_numbers<[2], [1], [1], [2], [0, 0, 0, 1, 1, 2], [0], [0]>} : vector<4x8x8xf32>, vector<4x8x8xf32>, vector<4x8x8xf32> -> vector<4x8x8xf32>
    "tpu.trace_stop"() : () -> ()
    %49 = vector.broadcast %47 : vector<4x8x1xf32> to vector<4x8x8xf32>
    %50 = arith.mulf %48, %49 : vector<4x8x8xf32>
    %51 = vector.extract_strided_slice %19 {offsets = [0, 0, 8], sizes = [4, 8, 8], strides = [1, 1, 1]} : vector<4x8x32xf32> to vector<4x8x8xf32>
    %52 = vector.extract_strided_slice %28 {offsets = [0, 0, 8], sizes = [4, 8, 8], strides = [1, 1, 1]} : vector<4x8x32xf32> to vector<4x8x8xf32>
    %53 = vector.extract_strided_slice %29 {offsets = [0, 0, 8], sizes = [4, 8, 8], strides = [1, 1, 1]} : vector<4x8x32xf32> to vector<4x8x8xf32>
    "tpu.trace_start"() <{level = 10 : i32, message = "ble,bme->blm"}> : () -> ()
    %cst_19 = arith.constant dense<0.000000e+00> : vector<4x8x8xf32>
    %54 = tpu.matmul %51, %52, %cst_19 {dimension_numbers = #tpu.dot_dimension_numbers<[2], [2], [1], [1], [0, 0, 0, 1, 1, 1], [0], [0]>} : vector<4x8x8xf32>, vector<4x8x8xf32>, vector<4x8x8xf32> -> vector<4x8x8xf32>
    %cst_20 = arith.constant 0.000000e+00 : f32
    "tpu.trace_stop"() : () -> ()
    %55 = vector.broadcast %cst_20 : f32 to vector<4x8x8xf32>
    %56 = arith.select %35, %54, %55 : vector<4x8x8xi1>, vector<4x8x8xf32>
    %cst_21 = arith.constant dense<0.000000e+00> : vector<4x8xf32>
    %57 = vector.multi_reduction <add>, %56, %cst_21 [2] : vector<4x8x8xf32> to vector<4x8xf32>
    %58 = vector.shape_cast %57 : vector<4x8xf32> to vector<4x8x1xf32>
    %cst_22 = arith.constant 9.99999997E-7 : f32
    %59 = vector.broadcast %cst_22 : f32 to vector<4x8x1xf32>
    %60 = arith.addf %58, %59 : vector<4x8x1xf32>
    %cst_23 = arith.constant 1.000000e+00 : f32
    %61 = vector.broadcast %cst_23 : f32 to vector<4x8x1xf32>
    %62 = arith.divf %61, %60 : vector<4x8x1xf32>
    "tpu.trace_start"() <{level = 10 : i32, message = "blm,bme->ble"}> : () -> ()
    %cst_24 = arith.constant dense<0.000000e+00> : vector<4x8x8xf32>
    %63 = tpu.matmul %56, %53, %cst_24 {dimension_numbers = #tpu.dot_dimension_numbers<[2], [1], [1], [2], [0, 0, 0, 1, 1, 2], [0], [0]>} : vector<4x8x8xf32>, vector<4x8x8xf32>, vector<4x8x8xf32> -> vector<4x8x8xf32>
    "tpu.trace_stop"() : () -> ()
    %64 = vector.broadcast %62 : vector<4x8x1xf32> to vector<4x8x8xf32>
    %65 = arith.mulf %63, %64 : vector<4x8x8xf32>
    %66 = vector.extract_strided_slice %19 {offsets = [0, 0, 16], sizes = [4, 8, 8], strides = [1, 1, 1]} : vector<4x8x32xf32> to vector<4x8x8xf32>
    %67 = vector.extract_strided_slice %28 {offsets = [0, 0, 16], sizes = [4, 8, 8], strides = [1, 1, 1]} : vector<4x8x32xf32> to vector<4x8x8xf32>
    %68 = vector.extract_strided_slice %29 {offsets = [0, 0, 16], sizes = [4, 8, 8], strides = [1, 1, 1]} : vector<4x8x32xf32> to vector<4x8x8xf32>
    "tpu.trace_start"() <{level = 10 : i32, message = "ble,bme->blm"}> : () -> ()
    %cst_25 = arith.constant dense<0.000000e+00> : vector<4x8x8xf32>
    %69 = tpu.matmul %66, %67, %cst_25 {dimension_numbers = #tpu.dot_dimension_numbers<[2], [2], [1], [1], [0, 0, 0, 1, 1, 1], [0], [0]>} : vector<4x8x8xf32>, vector<4x8x8xf32>, vector<4x8x8xf32> -> vector<4x8x8xf32>
    %cst_26 = arith.constant 0.000000e+00 : f32
    "tpu.trace_stop"() : () -> ()
    %70 = vector.broadcast %cst_26 : f32 to vector<4x8x8xf32>
    %71 = arith.select %35, %69, %70 : vector<4x8x8xi1>, vector<4x8x8xf32>
    %cst_27 = arith.constant dense<0.000000e+00> : vector<4x8xf32>
    %72 = vector.multi_reduction <add>, %71, %cst_27 [2] : vector<4x8x8xf32> to vector<4x8xf32>
    %73 = vector.shape_cast %72 : vector<4x8xf32> to vector<4x8x1xf32>
    %cst_28 = arith.constant 9.99999997E-7 : f32
    %74 = vector.broadcast %cst_28 : f32 to vector<4x8x1xf32>
    %75 = arith.addf %73, %74 : vector<4x8x1xf32>
    %cst_29 = arith.constant 1.000000e+00 : f32
    %76 = vector.broadcast %cst_29 : f32 to vector<4x8x1xf32>
    %77 = arith.divf %76, %75 : vector<4x8x1xf32>
    "tpu.trace_start"() <{level = 10 : i32, message = "blm,bme->ble"}> : () -> ()
    %cst_30 = arith.constant dense<0.000000e+00> : vector<4x8x8xf32>
    %78 = tpu.matmul %71, %68, %cst_30 {dimension_numbers = #tpu.dot_dimension_numbers<[2], [1], [1], [2], [0, 0, 0, 1, 1, 2], [0], [0]>} : vector<4x8x8xf32>, vector<4x8x8xf32>, vector<4x8x8xf32> -> vector<4x8x8xf32>
    "tpu.trace_stop"() : () -> ()
    %79 = vector.broadcast %77 : vector<4x8x1xf32> to vector<4x8x8xf32>
    %80 = arith.mulf %78, %79 : vector<4x8x8xf32>
    %81 = vector.extract_strided_slice %19 {offsets = [0, 0, 24], sizes = [4, 8, 8], strides = [1, 1, 1]} : vector<4x8x32xf32> to vector<4x8x8xf32>
    %82 = vector.extract_strided_slice %28 {offsets = [0, 0, 24], sizes = [4, 8, 8], strides = [1, 1, 1]} : vector<4x8x32xf32> to vector<4x8x8xf32>
    %83 = vector.extract_strided_slice %29 {offsets = [0, 0, 24], sizes = [4, 8, 8], strides = [1, 1, 1]} : vector<4x8x32xf32> to vector<4x8x8xf32>
    "tpu.trace_start"() <{level = 10 : i32, message = "ble,bme->blm"}> : () -> ()
    %cst_31 = arith.constant dense<0.000000e+00> : vector<4x8x8xf32>
    %84 = tpu.matmul %81, %82, %cst_31 {dimension_numbers = #tpu.dot_dimension_numbers<[2], [2], [1], [1], [0, 0, 0, 1, 1, 1], [0], [0]>} : vector<4x8x8xf32>, vector<4x8x8xf32>, vector<4x8x8xf32> -> vector<4x8x8xf32>
    %cst_32 = arith.constant 0.000000e+00 : f32
    "tpu.trace_stop"() : () -> ()
    %85 = vector.broadcast %cst_32 : f32 to vector<4x8x8xf32>
    %86 = arith.select %35, %84, %85 : vector<4x8x8xi1>, vector<4x8x8xf32>
    %cst_33 = arith.constant dense<0.000000e+00> : vector<4x8xf32>
    %87 = vector.multi_reduction <add>, %86, %cst_33 [2] : vector<4x8x8xf32> to vector<4x8xf32>
    %88 = vector.shape_cast %87 : vector<4x8xf32> to vector<4x8x1xf32>
    %cst_34 = arith.constant 9.99999997E-7 : f32
    %89 = vector.broadcast %cst_34 : f32 to vector<4x8x1xf32>
    %90 = arith.addf %88, %89 : vector<4x8x1xf32>
    %cst_35 = arith.constant 1.000000e+00 : f32
    %91 = vector.broadcast %cst_35 : f32 to vector<4x8x1xf32>
    %92 = arith.divf %91, %90 : vector<4x8x1xf32>
    "tpu.trace_start"() <{level = 10 : i32, message = "blm,bme->ble"}> : () -> ()
    %cst_36 = arith.constant dense<0.000000e+00> : vector<4x8x8xf32>
    %93 = tpu.matmul %86, %83, %cst_36 {dimension_numbers = #tpu.dot_dimension_numbers<[2], [1], [1], [2], [0, 0, 0, 1, 1, 2], [0], [0]>} : vector<4x8x8xf32>, vector<4x8x8xf32>, vector<4x8x8xf32> -> vector<4x8x8xf32>
    "tpu.trace_stop"() : () -> ()
    %94 = vector.broadcast %92 : vector<4x8x1xf32> to vector<4x8x8xf32>
    %95 = arith.mulf %93, %94 : vector<4x8x8xf32>
    %96 = tpu.concatenate %50, %65, %80, %95 in 2 : vector<4x8x8xf32>, vector<4x8x8xf32>, vector<4x8x8xf32>, vector<4x8x8xf32> -> vector<4x8x32xf32>
    %97 = vector.shape_cast %96 : vector<4x8x32xf32> to vector<4x256xf32>
    %c0_37 = arith.constant 0 : index
    %c0_38 = arith.constant 0 : index
    %c0_39 = arith.constant 0 : index
    %98 = vector.load %arg4[%c0_37, %c0_38, %c0_39] : memref<1x4x256xf32, #tpu.memory_space<vmem>>, vector<1x4x256xf32>
    %99 = vector.shape_cast %98 : vector<1x4x256xf32> to vector<4x256xf32>
    %100 = vector.shape_cast %97 : vector<4x256xf32> to vector<1x4x256xf32>
    tpu.vector_store %arg4[%c0_37, %c0_38, %c0_39], %100 {strides = array<i32>} : memref<1x4x256xf32, #tpu.memory_space<vmem>>, vector<1x4x256xf32>,
    return
  }
  func.func @transform_0(%arg0: i32) -> (i32, i32, i32, i32) {
    %c0_i32 = arith.constant 0 : i32
    %c0_i32_0 = arith.constant 0 : i32
    %c0_i32_1 = arith.constant 0 : i32
    %c0_i32_2 = arith.constant 0 : i32
    return %arg0, %c0_i32, %c0_i32_0, %c0_i32_1 : i32, i32, i32, i32
  }
  func.func @transform_1(%arg0: i32) -> (i32, i32) {
    %c0_i32 = arith.constant 0 : i32
    %c0_i32_0 = arith.constant 0 : i32
    %c0_i32_1 = arith.constant 0 : i32
    return %c0_i32, %c0_i32_0 : i32, i32
  }
  func.func @transform_2(%arg0: i32) -> (i32, i32) {
    %c0_i32 = arith.constant 0 : i32
    %c0_i32_0 = arith.constant 0 : i32
    %c0_i32_1 = arith.constant 0 : i32
    return %c0_i32, %c0_i32_0 : i32, i32
  }
  func.func @transform_3(%arg0: i32) -> (i32, i32, i32) {
    %c0_i32 = arith.constant 0 : i32
    %c0_i32_0 = arith.constant 0 : i32
    %c0_i32_1 = arith.constant 0 : i32
    return %arg0, %c0_i32, %c0_i32_0 : i32, i32, i32
  }
}

</mosaic_0001>

<bundles_post_ra>
// kernel: tpu_custom_call.1
= control target key start
LH: loop header
LB: loop body
LE: loop exit
PB: predicated region body
PF: predicated region fallthrough
CT: control target
= control target key end

     0   :  { %8 = vsyncpa [#allocation3], 0  ;;  %s4392_s0 = inlined_call_operand.hbm [shape: f32[2,4,8,32], index: 0, kind: input, shape index: {}]   ;;  %s4393_s1 = inlined_call_operand.hbm [shape: f32[32,96], index: 1, kind: input, shape index: {}]   ;;  %s4394_s2 = inlined_call_operand.vmem [shape: f32[1,96], index: 2, kind: input, shape index: {}]   ;;  %s4395_s3 = inlined_call_operand.hbm [shape: f32[2,4,256], index: 3, kind: output, shape index: {}]  }
   0x1   :  { %10 = vsyncpa [#allocation3 + $0x1], 0 }
   0x2   :  { %11 = vsyncpa [#allocation6], 0 }
   0x3   :  { %12 = vsyncpa [#allocation4], 0 }
   0x4   :  { %14 = vsyncpa [#allocation4 + $0x1], 0  ;;  %s3820_s12 = smov 0   ;;  %s3822_s13 = smov 0  }
   0x5   :  { %s3824_s14 = smov 0   ;;  %s3826_s15 = smov 0  }
   0x6 LB: > { %s3841_s16 = sadd.s32 4294967295, %s3774_s15   ;;  %s3203_s17 = sadd.s32 4294967294, %s3774_s15   ;;  %s3774_s15 = sphi %s3826_s15, %s4417_s15   ;;  %s3770_s14 = sphi %s3824_s14, %s4416_s14   ;;  %s3766_s13 = sphi %s3822_s13, %s4415_s13   ;;  %s3762_s12 = sphi %s3820_s12, %s4414_s12  }
   0x7   : > { %p40_p0 = scmp.ne.s32.totalorder %s3766_s13, %s3762_s12  ;;  %p4396_p1 = scmp.eq.s32.totalorder %s3841_s16, 0 }
   0x8   : > { %p112_p3 = scmp.eq.s32.totalorder %s3203_s17, 1  ;;  %p3204_p5 = scmp.ge.s32.totalorder %s3774_s15, 1 }
   0x9   : > { %p3850_p4 = por %p4396_p1, %p40_p0  ;;  %p119_p7 = scmp.lt.s32.totalorder %s3774_s15, 3 }
   0xa   : > { %p3855_p6 = por %p112_p3, %p40_p0  ;;  %s3776_s21 = smov [#allocation5]  }
   0xb   : > { %s4399_s18 = scalar_select %p3850_p4, 1, 0 }
   0xc   : > { %s4400_s19 = scalar_select %p3855_p6, 1, 0 }
   0xd   : > { %p3860_p8 = pnand %p3204_p5, %p119_p7  ;;  %s131_s22 = sshll.u32 %s3776_s21, 4  ;;  %s3864_s22 = int_to_ptr.vmem [resolvable:$true] %s131_s22 }
   0xe   : > { %s3876_s24 = sadd.s32 1, %s3774_s15   ;;  %s27_s25 = sadd.s32 1, %s3770_s14 }
   0xf   : > { %s4401_s20 = scalar_select %p3860_p8, 1, 0 }
  0x10   : > { %p3536_p9 = pneg %p3860_p8  ;;  %s24_s26 = ssub.s32 %s3774_s15, %s3876_s24 }
  0x11   : > { %s3646_s29 = scalar_lea.hbm %s4393_s1, 512 }
  0x12   : > { %p3871_p11 = pnand %p3536_p9, %p4396_p1  ;;  %p3647_p12 = scmp.ne.s32.totalorder %s4393_s1, %s3646_s29 }
  0x13   : > { %p3653_p5 = scmp.lt.u32.totalorder %s3646_s29, %s4393_s1 }
  0x14   : > { %p3648_p13 = pneg %p3871_p11 }
  0x16   : > { %p3649_p0 = pnand %p3648_p13, %p3647_p12 }
  0x18   : > { %p3650_p3 = pneg %p3649_p0 }
  0x1a   : > { %p3655_p7 = pnand %p3653_p5, %p3650_p3 }
  0x1c   : > { %3658 = shalt.err (!%p3655_p7)
}
  0x1d   : > { %s3659_s7 = scalar_lea.vmem %s3864_s22, 512  ;;  %p3667_p2 = scmp.lt.s32.totalorder %s3864_s22, %s3864_s22 }
  0x1e   : > { %p3660_p9 = scmp.ne.s32.totalorder %s3864_s22, %s3659_s7  ;;  %p3668_p6 = scmp.lt.s32.totalorder %s3659_s7, %s3659_s7 }
  0x20   : > { %p3662_p10 = pnand %p3660_p9, %p3648_p13  ;;  %p3669_p4 = por %p3668_p6, %p3667_p2 }
  0x22   : > { %p3663_p1 = pneg %p3662_p10 }
  0x24   : > { %p3670_p8 = pnand %p3669_p4, %p3663_p1 }
  0x26   : > { %3673 = shalt.err (!%p3670_p8)
}
  0x27   : > { %s3777_s8 = smov 128   ;;  %s3778_s9 = smov 8  }
  0x28   : > { %3539 = dma.hbm_to_vmem [thread:$0]  (!%p3871_p11), %s4393_s1, 512, %s3864_s22, [#allocation6], %s3777_s8, %s3777_s8, %s3778_s9  }
  0x29   : > { %p25_p1 = scmp.eq.s32.totalorder %s24_s26, 0  ;;  %p34_p2 = scmp.ne.s32.totalorder %s3770_s14, %s3766_s13 }
  0x2a   : > { %p35_p4 = scmp.eq.s32.totalorder %s3774_s15, 0  ;;  %p3549_p6 = scmp.lt.s32.totalorder %s3774_s15, 2 }
  0x2b   : > { %s3910_s17 = scalar_select %p25_p1, %s3770_s14, %s27_s25  }
  0x2c   : > { %p36_p8 = por %p35_p4, %p34_p2  ;;  %p4403_p10 = scmp.eq.s32.totalorder %s3841_s16, 1 }
  0x2d   : > { %s148_s23 = sand.u32 1, %s3770_s14   ;;  %s3272_s27 = sshll.u32 %s3774_s15, 9 }
  0x2e   : > { %p3914_p12 = por %p4403_p10, %p34_p2  ;;  %s3207_s28 = sshll.u32 %s148_s23, 5 }
  0x2f   : > { %s3923_s4 = scalar_lea.hbm %s4392_s0, %s3272_s27  ;;  %s152_s22 = scalar_lea.vmem [#allocation2], %s3207_s28 }
  0x30   : > { %s159_s25 = sshll.u32 %s152_s22, 4  ;;  %p3925_p11 = pnand %p3549_p6, %p36_p8  ;;  %s3929_s25 = int_to_ptr.vmem [resolvable:$true] %s159_s25 }
  0x31   : > { %s3931_s5 = scalar_lea.sflag [#allocation3], %s148_s23  ;;  %s3674_s6 = scalar_lea.hbm %s3923_s4, 512 }
  0x32   : > { %p3675_p13 = scmp.ne.s32.totalorder %s3923_s4, %s3674_s6  ;;  %p3676_p0 = pneg %p3925_p11 }
  0x33   : > { %s3679_s11 = scalar_lea.hbm %s4392_s0, 1024  ;;  %p3680_p7 = scmp.lt.u32.totalorder %s3923_s4, %s4392_s0 }
  0x34   : > { %p3677_p3 = pnand %p3676_p0, %p3675_p13  ;;  %p3681_p9 = scmp.lt.u32.totalorder %s3679_s11, %s3674_s6 }
  0x35   : > { %p3683_p2 = scmp.lt.u32.totalorder %s3674_s6, %s3923_s4 }
  0x36   : > { %p3678_p5 = pneg %p3677_p3  ;;  %p3682_p1 = por %p3681_p9, %p3680_p7 }
  0x38   : > { %p3684_p4 = por %p3683_p2, %p3682_p1 }
  0x3a   : > { %p3685_p6 = pnand %p3684_p4, %p3678_p5 }
  0x3c   : > { %3688 = shalt.err (!%p3685_p6)
}
  0x3d   : > { %s3689_s23 = scalar_lea.vmem %s3929_s25, 512  ;;  %s3779_s29 = smov [#allocation2]  }
  0x3e   : > { %p3690_p8 = scmp.ne.s32.totalorder %s3929_s25, %s3689_s23  ;;  %s3694_s30 = sshll.u32 %s3779_s29, 4  ;;  %s3695_s30 = int_to_ptr.vmem [resolvable:$false] %s3694_s30 }
  0x3f   : > { %s3696_s22 = scalar_lea.vmem %s3695_s30, 1024  ;;  %p3697_p3 = scmp.lt.s32.totalorder %s3929_s25, %s3695_s30 }
  0x40   : > { %p3692_p10 = pnand %p3690_p8, %p3676_p0  ;;  %p3698_p7 = scmp.lt.s32.totalorder %s3696_s22, %s3689_s23 }
  0x42   : > { %p3693_p13 = pneg %p3692_p10  ;;  %p3699_p9 = por %p3698_p7, %p3697_p3 }
  0x44   : > { %p3700_p1 = pnand %p3699_p9, %p3693_p13 }
  0x46   : > { %3703 = shalt.err (!%p3700_p1)
}
  0x47   : > { %3543 = dma.hbm_to_vmem [thread:$0]  (!%p3925_p11), %s3923_s4, 512, %s3929_s25, %s3931_s5, %s3777_s8, %s3777_s8, %s3778_s9  }
  0x48   : > { %p4406_p0 = scmp.ne.s32.totalorder %s4401_s20, 0 }
  0x49   : > { %s3965_s6 = sand.u32 (!%p4406_p0), 1, %s3766_s13   ;;  %p4407_p5 = scmp.ne.s32.totalorder (!%p4406_p0), %s4399_s18, 0 }
  0x4a   : > { %171 = sbr.rel (%p4406_p0) target bundleno = 1819 (0x71b), region = 32  ;;  %s3211_s7 = sshll.u32 (!%p4406_p0), %s3965_s6, 5 }
  0x4b   : > { %s174_s10 = scalar_lea.sflag (!%p4406_p0), [#allocation3], %s3965_s6  ;;  %s177_s11 = scalar_lea.vmem (!%p4406_p0), [#allocation2], %s3211_s7 }
  0x51   : > { %3749 = dma.done.wait (%p4407_p5), %s174_s10, 512  }
  0x52   : > { %3751 = vsyncadd (%p4407_p5), %s174_s10, 4294966784  ;;  %p4408_p2 = scmp.eq.s32.totalorder %s3841_s16, 0 }
  0x54   : > { %3753 = dma.done.wait (%p4408_p2), [#allocation6], 512   ;;  %p4409_p11 = pmov %p4408_p2 }
  0x55   : > { %vm219_vm0 = vcmask 261120   ;;  %v208_v0 = vld [vmem:[#allocation5] sm:$0xff]  ;;  %v209_v1 = vld [vmem:[#allocation5 + $0x8] sm:$0xff]  ;;  %v210_v2 = vld [vmem:[#allocation5 + $0x10] sm:$0xff]  ;;  %v3780_v10 = vmov 0.0   ;;  %vm3781_vm1 = vmmov 0   ;;  %v341_v48 = vlaneseq }
  0x56   : > { %3755 = vsyncadd (%p4409_p11), [#allocation6], 4294966784  ;;  %v3520_v3 = vpack.c.bf16 %v209_v1, %v208_v0  ;;  %v211_v4 = vld [vmem:[#allocation5 + $0x18] sm:$0xff]  ;;  %v204_v5 = vld [vmem:[%s177_s11] sm:$0xff]  ;;  %3360 = vmatprep.subr.mxu1 %v3780_v10  ;;  %3362 = vmatprep.mubr.msk.f32.mxu1 %vm3781_vm1, %v3780_v10  ;;  %s3782_s8 = smov 96   ;;  %s3783_s9 = smov 64  }
  0x57   : > { %v3524_v6 = vpack.c.bf16 %v211_v4, %v210_v2  ;;  %3354 = vmatprep.mubr.msk.f32.mxu0 %vm219_vm0, %v204_v5  ;;  %v205_v7 = vld [vmem:[%s177_s11 + $0x8] sm:$0xff]  ;;  %v206_v8 = vld [vmem:[%s177_s11 + $0x10] sm:$0xff]  ;;  %v207_v9 = vld [vmem:[%s177_s11 + $0x18] sm:$0xff]  ;;  %s3784_s4 = smov 88   ;;  %s3785_s25 = smov 120   ;;  %vm351_vm6 = vcmask 64512  }
  0x58   : > { %3521 = vmatprep.subr.bf16.mxu0 %v3520_v3  ;;  %v3214_v11 = vld [vmem:[%s4394_s2] ss:$0 sm:$0xff]  ;;  %s3786_s26 = smov 56   ;;  %s3787_s5 = smov 80   ;;  %v4096_v50 = vshrl.u32 %v341_v48, 7  ;;  %v344_v51 = vand.u32 127, %v341_v48 }
  0x59   : > { %3523 = vmatpush3.bf16.msra.mxu0 %v3520_v3  ;;  %s3788_s27 = smov 112   ;;  %s3789_s28 = smov 48   ;;  %vm2993_vm8 = vcmask 130048   ;;  %vm2998_vm9 = vcmask 195584   ;;  %vm3096_vm10 = vcmask 523264   ;;  %vm3098_vm11 = vcmask 785408  }
  0x5a   : > { %3525 = vmatprep.subr.bf16.mxu0 %v3524_v6  ;;  %s3790_s23 = smov 72   ;;  %s3791_s29 = smov 104   ;;  %vm4099_vm7 = vcmp.le.s32.totalorder %v344_v51, %v4096_v50 }
  0x5b   : > { %s3792_s30 = smov 40   ;;  %s3793_s22 = smov 8  }
  0x5c   : > { %s3794_s7 = smov 16   ;;  %s3795_s10 = smov 24  }
  0x5d   : > { %3527 = vmatpush3.bf16.msra.mxu0 %v3524_v6  ;;  %s3798_s11 = smov 32   ;;  %s3213_s18 = sshll.u32 %s3965_s6, 3 }
  0x5e   : > { %3375 = vmatprep.subr.mxu0 %v3780_v10  ;;  %s3273_s20 = sshll.u32 %s3841_s16, 7  ;;  %s3109_s16 = scalar_lea.sflag [#allocation4], %s3965_s6 }
  0x60   : > { %3355 = vmatmul.mubr.msk.f32.vlgmr.msra.gmra.mrb[0].mxu0 %vm219_vm0, %v205_v7 }
  0x61   : > { %3357 = vmatprep.mubr.msk.f32.mxu0 %vm219_vm0, %v206_v8 }
  0x64   : > { %3358 = vmatmul.mubr.msk.f32.gmra.mrb[2].mxu0 %vm219_vm0, %v207_v9 }
  0x65   : > { %3377 = vmatprep.mubr.msk.f32.mxu0 %vm3781_vm1, %v3780_v10 }
 0x133   : > { %v3356_v12 = vpop.f32.mrb[0].mxu0 }
 0x134   : > { %v3986_v13 = vadd.f32 %v3356_v12, %v3214_v11  ;;  %v298_v14 = vpop.f32.mrb[1].mxu0 }
 0x135   : > { %v3988_v15 = vadd.f32 %v3214_v11, %v298_v14 }
 0x136   : > { %v326_v16 = vmin.f32 %v3986_v13, 0.0  ;;  %v322_v33 = vadd.f32 1.0, %v3986_v13  ;;  %vm318_vm4 = vcmp.gt.f32.partialorder %v3986_v13, 0.0 }
 0x137   : > { %v325_v17 = vmin.f32 %v3988_v15, 0.0  ;;  %v3359_v18 = vpop.f32.mrb[2].mxu0  ;;  %v321_v28 = vadd.f32 1.0, %v3988_v15  ;;  %vm317_vm2 = vcmp.gt.f32.partialorder %v3988_v15, 0.0 }
 0x138   : > { %v3992_v19 = vadd.f32 %v3359_v18, %v3214_v11  ;;  %v308_v20 = vpop.f32.mrb[3].mxu0  ;;  %v331_v21 = vmul.f32 1.442695, %v326_v16 }
 0x139   : > { %v329_v22 = vmul.f32 1.442695, %v325_v17  ;;  %v3994_v23 = vadd.f32 %v3214_v11, %v308_v20 }
 0x13a   : > { %v328_v24 = vmin.f32 %v3992_v19, 0.0  ;;  %v324_v38 = vadd.f32 1.0, %v3992_v19  ;;  %vm320_vm5 = vcmp.gt.f32.partialorder %v3992_v19, 0.0 }
 0x13b   : > { %3606 = vpow2.f32 %v329_v22  ;;  %v327_v25 = vmin.f32 %v3994_v23, 0.0  ;;  %v323_v32 = vadd.f32 1.0, %v3994_v23  ;;  %vm319_vm3 = vcmp.gt.f32.partialorder %v3994_v23, 0.0 }
 0x13c   : > { %3608 = vpow2.f32 %v331_v21  ;;  %v335_v26 = vmul.f32 1.442695, %v328_v24 }
 0x13d   : > { %v333_v27 = vmul.f32 1.442695, %v327_v25 }
 0x13f   : > { %3610 = vpow2.f32 %v333_v27 }
 0x140   : > { %3612 = vpow2.f32 %v335_v26 }
 0x145   : > { %v3607_v29 = vpop.eup %3606 }
 0x146   : > { %v4004_v30 = vsel %vm317_vm2, %v321_v28, %v3607_v29  ;;  %v3609_v31 = vpop.eup %3608 }
 0x147   : > { %349 = vrot.lane.b32.xlu0 %v4004_v30, %s3782_s8  ;;  %v4014_v36 = vsel %vm318_vm4, %v322_v33, %v3609_v31 }
 0x149   : > { %v3611_v34 = vpop.eup %3610 }
 0x14a   : > { %v4012_v35 = vsel %vm319_vm3, %v323_v32, %v3611_v34  ;;  %v3613_v37 = vpop.eup %3612 }
 0x14b   : > { %504 = vrot.lane.b32.xlu1 %v4012_v35, %s3782_s8  ;;  %427 = vrot.lane.b32.xlu0 %v4014_v36, %s3782_s8  ;;  %v4022_v39 = vsel %vm320_vm5, %v324_v38, %v3613_v37 }
 0x14f   : > { %581 = vrot.lane.b32.xlu1 %v4022_v39, %s3782_s8  ;;  %686 = vrot.lane.b32.xlu0 %v3988_v15, %s3783_s9 }
 0x153   : > { %763 = vrot.lane.b32.xlu1 %v3986_v13, %s3783_s9  ;;  %840 = vrot.lane.b32.xlu0 %v3994_v23, %s3783_s9 }
 0x157   : > { %917 = vrot.lane.b32.xlu1 %v3992_v19, %s3783_s9  ;;  %999 = vrot.lane.b32.xlu0 %v4004_v30, %s3784_s4 }
 0x15b   : > { %1077 = vrot.lane.b32.xlu1 %v4014_v36, %s3784_s4  ;;  %997 = vrot.lane.b32.xlu0 %v4004_v30, %s3785_s25 }
 0x15f   : > { %1075 = vrot.lane.b32.xlu1 %v4014_v36, %s3785_s25  ;;  %1155 = vrot.lane.b32.xlu0 %v4012_v35, %s3784_s4 }
 0x163   : > { %1233 = vrot.lane.b32.xlu1 %v4022_v39, %s3784_s4  ;;  %1153 = vrot.lane.b32.xlu0 %v4012_v35, %s3785_s25  ;;  %s203_s4 = scalar_lea.vmem [#allocation7], %s3213_s18 }
 0x167   : > { %1231 = vrot.lane.b32.xlu1 %v4022_v39, %s3785_s25  ;;  %1337 = vrot.lane.b32.xlu0 %v3988_v15, %s3786_s26  ;;  %s3123_s25 = sshll.u32 %s203_s4, 4  ;;  %s4350_s25 = int_to_ptr.vmem [resolvable:$true] %s3123_s25 }
 0x16b   : > { %1413 = vrot.lane.b32.xlu1 %v3986_v13, %s3786_s26  ;;  %1489 = vrot.lane.b32.xlu0 %v3994_v23, %s3786_s26 }
 0x16f   : > { %1565 = vrot.lane.b32.xlu1 %v3992_v19, %s3786_s26  ;;  %1647 = vrot.lane.b32.xlu0 %v4004_v30, %s3787_s5  ;;  %s4348_s26 = scalar_lea.hbm %s4395_s3, %s3273_s20 }
 0x173   : > { %1725 = vrot.lane.b32.xlu1 %v4014_v36, %s3787_s5  ;;  %1645 = vrot.lane.b32.xlu0 %v4004_v30, %s3788_s27 }
 0x177   : > { %1723 = vrot.lane.b32.xlu1 %v4014_v36, %s3788_s27  ;;  %1803 = vrot.lane.b32.xlu0 %v4012_v35, %s3787_s5 }
 0x17b   : > { %1881 = vrot.lane.b32.xlu1 %v4022_v39, %s3787_s5  ;;  %1801 = vrot.lane.b32.xlu0 %v4012_v35, %s3788_s27  ;;  %s3704_s5 = scalar_lea.vmem %s4350_s25, 128 }
 0x17c   : > { %p3705_p4 = scmp.ne.s32.totalorder %s4350_s25, %s3704_s5 }
 0x17e   : > { %p3706_p6 = pnand %p3705_p4, %p3914_p12 }
 0x17f   : > { %1879 = vrot.lane.b32.xlu1 %v4022_v39, %s3788_s27  ;;  %1985 = vrot.lane.b32.xlu0 %v3988_v15, %s3789_s28  ;;  %s3799_s27 = smov [#allocation7]  }
 0x180   : > { %p3707_p8 = pneg %p3706_p6 }
 0x183   : > { %2061 = vrot.lane.b32.xlu1 %v3986_v13, %s3789_s28  ;;  %2137 = vrot.lane.b32.xlu0 %v3994_v23, %s3789_s28 }
 0x187   : > { %2213 = vrot.lane.b32.xlu1 %v3992_v19, %s3789_s28  ;;  %2295 = vrot.lane.b32.xlu0 %v4004_v30, %s3790_s23  ;;  %s3708_s28 = sshll.u32 %s3799_s27, 4  ;;  %s3709_s28 = int_to_ptr.vmem [resolvable:$false] %s3708_s28 }
 0x188   : > { %p3711_p10 = scmp.lt.s32.totalorder %s4350_s25, %s3709_s28 }
 0x18b   : > { %2373 = vrot.lane.b32.xlu1 %v4014_v36, %s3790_s23  ;;  %2293 = vrot.lane.b32.xlu0 %v4004_v30, %s3791_s29 }
 0x18f   : > { %2371 = vrot.lane.b32.xlu1 %v4014_v36, %s3791_s29  ;;  %2451 = vrot.lane.b32.xlu0 %v4012_v35, %s3790_s23 }
 0x193   : > { %2529 = vrot.lane.b32.xlu1 %v4022_v39, %s3790_s23  ;;  %2449 = vrot.lane.b32.xlu0 %v4012_v35, %s3791_s29  ;;  %s3710_s23 = scalar_lea.vmem %s3709_s28, 256 }
 0x194   : > { %p3712_p13 = scmp.lt.s32.totalorder %s3710_s23, %s3704_s5 }
 0x196   : > { %p3713_p3 = por %p3712_p13, %p3711_p10 }
 0x197   : > { %2527 = vrot.lane.b32.xlu1 %v4022_v39, %s3791_s29  ;;  %2633 = vrot.lane.b32.xlu0 %v3988_v15, %s3792_s30 }
 0x198   : > { %p3714_p7 = pnand %p3713_p3, %p3707_p8 }
 0x19b   : > { %2709 = vrot.lane.b32.xlu1 %v3986_v13, %s3792_s30  ;;  %2785 = vrot.lane.b32.xlu0 %v3994_v23, %s3792_s30 }
 0x19f   : > { %2861 = vrot.lane.b32.xlu1 %v3992_v19, %s3792_s30 }
 0x1b9   : > { %v350_v40 = vpop.permute.xlu0 %349 }
 0x1ba   : > { %3361 = vmatpush3.xpose.msk.msra.mxu1 %vm351_vm6, %v350_v40 }
 0x1bb   : > { %3365 = vmatprep.subr.mxu1 %v3780_v10 }
 0x1bd   : > { %v505_v41 = vpop.permute.xlu1 %504  ;;  %3363 = vmatmul.mubr.msk.f32.vlgmr.msra.gmra.mrb[0].mxu1 %vm351_vm6, %v4004_v30  ;;  %v428_v42 = vpop.permute.xlu0 %427 }
 0x1be   : > { %3366 = vmatpush3.xpose.msk.msra.mxu1 %vm351_vm6, %v428_v42  ;;  %3367 = vmatprep.mubr.msk.f32.mxu1 %vm3781_vm1, %v3780_v10 }
 0x1bf   : > { %3370 = vmatprep.subr.mxu1 %v3780_v10 }
 0x1c1   : > { %v582_v43 = vpop.permute.xlu1 %581  ;;  %3368 = vmatmul.mubr.msk.f32.vlgmr.msra.gmra.mrb[2].mxu1 %vm351_vm6, %v4014_v36  ;;  %v687_v44 = vpop.permute.xlu0 %686 }
 0x1c2   : > { %3371 = vmatpush3.xpose.msk.msra.mxu1 %vm351_vm6, %v505_v41  ;;  %3376 = vmatpush3.xpose.msk.msra.mxu0 %vm351_vm6, %v582_v43 }
 0x1c3   : > { %3372 = vmatprep.mubr.msk.f32.mxu1 %vm3781_vm1, %v3780_v10  ;;  %3385 = vmatprep.subr.mxu0 %v3780_v10 }
 0x1c4   : > { %3380 = vmatprep.subr.mxu1 %v3780_v10 }
 0x1c5   : > { %3378 = vmatmul.mubr.msk.f32.vlgmr.msra.gmra.mrb[4].mxu0 %vm351_vm6, %v4022_v39  ;;  %v764_v45 = vpop.permute.xlu1 %763  ;;  %3373 = vmatmul.mubr.msk.f32.vlgmr.msra.gmra.mrb[4].mxu1 %vm351_vm6, %v4012_v35  ;;  %v841_v46 = vpop.permute.xlu0 %840 }
 0x1c6   : > { %3381 = vmatpush3.msra.mxu1 %v687_v44  ;;  %3386 = vmatpush3.msra.mxu0 %v764_v45 }
 0x1c7   : > { %3382 = vmatprep.mubr.msk.f32.mxu1 %vm3781_vm1, %v3780_v10  ;;  %3390 = vmatprep.subr.mxu1 %v3780_v10 }
 0x1c8   : > { %3387 = vmatprep.mubr.msk.f32.mxu0 %vm3781_vm1, %v3780_v10  ;;  %3395 = vmatprep.subr.mxu0 %v3780_v10 }
 0x1c9   : > { %v918_v47 = vpop.permute.xlu1 %917  ;;  %v1000_v49 = vpop.permute.xlu0 %999 }
 0x1cd   : > { %v1078_v52 = vpop.permute.xlu1 %1077  ;;  %v998_v54 = vpop.permute.xlu0 %997 }
 0x1d1   : > { %v1076_v56 = vpop.permute.xlu1 %1075  ;;  %v1156_v62 = vpop.permute.xlu0 %1155 }
 0x1d5   : > { %v1234_v63 = vpop.permute.xlu1 %1233  ;;  %v1154_v6 = vpop.permute.xlu0 %1153 }
 0x1d9   : > { %v1232_v7 = vpop.permute.xlu1 %1231  ;;  %v1338_v8 = vpop.permute.xlu0 %1337 }
 0x1dd   : > { %v1414_v9 = vpop.permute.xlu1 %1413  ;;  %v1490_v11 = vpop.permute.xlu0 %1489 }
 0x1e1   : > { %v1566_v13 = vpop.permute.xlu1 %1565  ;;  %v1648_v16 = vpop.permute.xlu0 %1647 }
 0x1e5   : > { %v1726_v18 = vpop.permute.xlu1 %1725  ;;  %v1646_v23 = vpop.permute.xlu0 %1645 }
 0x1e9   : > { %v1724_v27 = vpop.permute.xlu1 %1723  ;;  %v1804_v33 = vpop.permute.xlu0 %1803 }
 0x1ed   : > { %v1882_v39 = vpop.permute.xlu1 %1881  ;;  %v1802_v42 = vpop.permute.xlu0 %1801 }
 0x1f1   : > { %v1880_v44 = vpop.permute.xlu1 %1879  ;;  %v1986_v45 = vpop.permute.xlu0 %1985 }
 0x290   : > { %v422_v55 = vpop.f32.mrb[0].mxu1 }
 0x291   : > { %v4105_v57 = vsel %vm4099_vm7, %v422_v55, 0.0  ;;  %v3364_v58 = vpop.f32.mrb[1].mxu1 }
 0x292   : > { %3383 = vmatmul.mubr.msk.f32.vlgmr.msra.gmra.mrb[6].mxu1 %vm351_vm6, %v4105_v57 }
 0x293   : > { %3391 = vmatpush3.msra.mxu1 %v841_v46  ;;  %3392 = vmatprep.mubr.msk.f32.mxu1 %vm3781_vm1, %v3780_v10  ;;  %v2062_v46 = vpop.permute.xlu1 %2061 }
 0x294   : > { %v499_v59 = vpop.f32.mrb[2].mxu1  ;;  %3400 = vmatprep.subr.mxu1 %v3780_v10 }
 0x295   : > { %v4114_v60 = vsel %vm4099_vm7, %v499_v59, 0.0  ;;  %v3369_v61 = vpop.f32.mrb[3].mxu1 }
 0x296   : > { %3388 = vmatmul.mubr.msk.f32.vlgmr.msra.gmra.mrb[6].mxu0 %vm351_vm6, %v4114_v60 }
 0x297   : > { %3396 = vmatpush3.msra.mxu0 %v918_v47  ;;  %3397 = vmatprep.mubr.msk.f32.mxu0 %vm3781_vm1, %v3780_v10  ;;  %v2138_v47 = vpop.permute.xlu0 %2137 }
 0x298   : > { %v576_v0 = vpop.f32.mrb[4].mxu1  ;;  %v653_v1 = vpop.f32.mrb[4].mxu0  ;;  %3405 = vmatprep.subr.mxu0 %v3780_v10 }
 0x299   : > { %v4123_v2 = vsel %vm4099_vm7, %v576_v0, 0.0  ;;  %v4127_v3 = vsel %vm4099_vm7, %v653_v1, 0.0  ;;  %v3374_v4 = vpop.f32.mrb[5].mxu1  ;;  %v3379_v5 = vpop.f32.mrb[5].mxu0 }
 0x29a   : > { %3393 = vmatmul.mubr.msk.f32.vlgmr.msra.gmra.mrb[8].mxu1 %vm351_vm6, %v4123_v2  ;;  %3398 = vmatmul.mubr.msk.f32.vlgmr.msra.gmra.mrb[8].mxu0 %vm351_vm6, %v4127_v3  ;;  %v667_v53 = vsel %vm351_vm6, %v4123_v2, 0.0 }
 0x29b   : > { %3401 = vmatpush3.xpose.msk.msra.mxu1 %vm351_vm6, %v1000_v49  ;;  %3402 = vmatprep.mubr.msk.f32.mxu1 %vm3781_vm1, %v3780_v10  ;;  %v2214_v49 = vpop.permute.xlu1 %2213 }
 0x29c   : > { %3410 = vmatprep.subr.mxu1 %v3780_v10  ;;  %3407 = vmatprep.mubr.msk.f32.mxu0 %vm3781_vm1, %v3780_v10 }
 0x29e   : > { %3406 = vmatpush3.xpose.msk.msra.mxu0 %vm351_vm6, %v1078_v52  ;;  %3403 = vmatmul.mubr.msk.f32.vlgmr.msra.gmra.mrb[10].mxu1 %vm351_vm6, %v998_v54  ;;  %v2296_v54 = vpop.permute.xlu0 %2295 }
 0x29f   : > { %3411 = vmatpush3.xpose.msk.msra.mxu1 %vm351_vm6, %v1156_v62  ;;  %3415 = vmatprep.subr.mxu0 %v3780_v10  ;;  %v2374_v59 = vpop.permute.xlu1 %2373 }
 0x2a0   : > { %3412 = vmatprep.mubr.msk.f32.mxu1 %vm3781_vm1, %v3780_v10  ;;  %3420 = vmatprep.subr.mxu1 %v3780_v10 }
 0x2a1   : > { %3408 = vmatmul.mubr.msk.f32.vlgmr.msra.gmra.mrb[10].mxu0 %vm351_vm6, %v1076_v56 }
 0x2a2   : > { %3416 = vmatpush3.xpose.msk.msra.mxu0 %vm351_vm6, %v1234_v63  ;;  %3413 = vmatmul.mubr.msk.f32.vlgmr.msra.gmra.mrb[12].mxu1 %vm351_vm6, %v1154_v6  ;;  %v2294_v63 = vpop.permute.xlu0 %2293 }
 0x2a3   : > { %3421 = vmatpush3.msra.mxu1 %v1338_v8  ;;  %3417 = vmatprep.mubr.msk.f32.mxu0 %vm3781_vm1, %v3780_v10  ;;  %v2372_v5 = vpop.permute.xlu1 %2371 }
 0x2a4   : > { %3425 = vmatprep.subr.mxu0 %v3780_v10  ;;  %3422 = vmatprep.mubr.msk.f32.mxu1 %vm3781_vm1, %v3780_v10 }
 0x2a5   : > { %3418 = vmatmul.mubr.msk.f32.vlgmr.msra.gmra.mrb[12].mxu0 %vm351_vm6, %v1232_v7  ;;  %3430 = vmatprep.subr.mxu1 %v3780_v10 }
 0x2a6   : > { %3426 = vmatpush3.msra.mxu0 %v1414_v9  ;;  %3427 = vmatprep.mubr.msk.f32.mxu0 %vm3781_vm1, %v3780_v10 }
 0x2a7   : > { %3435 = vmatprep.subr.mxu0 %v3780_v10 }
 0x365   : > { %v4159_v12 = vpop.f32.mrb[6].mxu1 }
 0x366   : > { %v3384_v14 = vpop.f32.mrb[7].mxu1 }
 0x369   : > { %v4161_v15 = vpop.f32.mrb[6].mxu0 }
 0x36a   : > { %v3389_v17 = vpop.f32.mrb[7].mxu0 }
 0x36d   : > { %v4163_v19 = vpop.f32.mrb[8].mxu1  ;;  %v4165_v20 = vpop.f32.mrb[8].mxu0 }
 0x36e   : > { %v3394_v21 = vpop.f32.mrb[9].mxu1  ;;  %v3399_v22 = vpop.f32.mrb[9].mxu0 }
 0x36f   : > { %v2530_v22 = vpop.permute.xlu1 %2529 }
 0x371   : > { %v1071_v24 = vpop.f32.mrb[10].mxu1 }
 0x372   : > { %v1309_v25 = vsel %vm4099_vm7, %v1071_v24, 0.0  ;;  %v3404_v26 = vpop.f32.mrb[11].mxu1 }
 0x373   : > { %3423 = vmatmul.mubr.msk.f32.vlgmr.msra.gmra.mrb[14].mxu1 %vm351_vm6, %v1309_v25  ;;  %v1313_v28 = vsel %vm351_vm6, %v1309_v25, 0.0 }
 0x374   : > { %v1149_v29 = vpop.f32.mrb[10].mxu0  ;;  %3431 = vmatpush3.msra.mxu1 %v1490_v11  ;;  %1314 = vadd.xlane.f32.xlu0 %v1313_v28 }
 0x375   : > { %v1310_v30 = vsel %vm4099_vm7, %v1149_v29, 0.0  ;;  %v3409_v31 = vpop.f32.mrb[11].mxu0  ;;  %v1227_v32 = vpop.f32.mrb[12].mxu1  ;;  %3432 = vmatprep.mubr.msk.f32.mxu1 %vm3781_vm1, %v3780_v10  ;;  %3440 = vmatprep.subr.mxu1 %v3780_v10 }
 0x376   : > { %v1311_v34 = vsel %vm4099_vm7, %v1227_v32, 0.0  ;;  %3428 = vmatmul.mubr.msk.f32.vlgmr.msra.gmra.mrb[14].mxu0 %vm351_vm6, %v1310_v30  ;;  %v1316_v35 = vsel %vm351_vm6, %v1310_v30, 0.0  ;;  %v3414_v36 = vpop.f32.mrb[13].mxu1 }
 0x377   : > { %3436 = vmatpush3.msra.mxu0 %v1566_v13  ;;  %1317 = vadd.xlane.f32.xlu1 %v1316_v35  ;;  %v1319_v37 = vsel %vm351_vm6, %v1311_v34, 0.0  ;;  %v2452_v13 = vpop.permute.xlu0 %2451 }
 0x378   : > { %v1305_v38 = vpop.f32.mrb[12].mxu0  ;;  %3433 = vmatmul.mubr.msk.f32.vlgmr.msra.gmra.mrb[16].mxu1 %vm351_vm6, %v1311_v34  ;;  %3437 = vmatprep.mubr.msk.f32.mxu0 %vm3781_vm1, %v3780_v10 }
 0x379   : > { %v1312_v40 = vsel %vm4099_vm7, %v1305_v38, 0.0  ;;  %v3419_v41 = vpop.f32.mrb[13].mxu0  ;;  %1320 = vadd.xlane.f32.xlu0 %v1319_v37  ;;  %3445 = vmatprep.subr.mxu0 %v3780_v10 }
 0x37a   : > { %3438 = vmatmul.mubr.msk.f32.vlgmr.msra.gmra.mrb[16].mxu0 %vm351_vm6, %v1312_v40  ;;  %3442 = vmatprep.mubr.msk.f32.mxu1 %vm3781_vm1, %v3780_v10  ;;  %v1322_v43 = vsel %vm351_vm6, %v1312_v40, 0.0 }
 0x37b   : > { %3441 = vmatpush3.xpose.msk.msra.mxu1 %vm351_vm6, %v1648_v16  ;;  %3447 = vmatprep.mubr.msk.f32.mxu0 %vm3781_vm1, %v3780_v10  ;;  %v2450_v26 = vpop.permute.xlu0 %2449 }
 0x37c   : > { %3450 = vmatprep.subr.mxu1 %v3780_v10 }
 0x37d   : > { %1323 = vadd.xlane.f32.xlu0 %v1322_v43 }
 0x37e   : > { %3446 = vmatpush3.xpose.msk.msra.mxu0 %vm351_vm6, %v1726_v18  ;;  %3443 = vmatmul.mubr.msk.f32.vlgmr.msra.gmra.mrb[18].mxu1 %vm351_vm6, %v1646_v23 }
 0x37f   : > { %3451 = vmatpush3.xpose.msk.msra.mxu1 %vm351_vm6, %v1804_v33  ;;  %3455 = vmatprep.subr.mxu0 %v3780_v10  ;;  %v2634_v28 = vpop.permute.xlu0 %2633 }
 0x380   : > { %3452 = vmatprep.mubr.msk.f32.mxu1 %vm3781_vm1, %v3780_v10  ;;  %3460 = vmatprep.subr.mxu1 %v3780_v10 }
 0x381   : > { %3448 = vmatmul.mubr.msk.f32.vlgmr.msra.gmra.mrb[18].mxu0 %vm351_vm6, %v1724_v27  ;;  %v2528_v27 = vpop.permute.xlu1 %2527 }
 0x382   : > { %3456 = vmatpush3.xpose.msk.msra.mxu0 %vm351_vm6, %v1882_v39  ;;  %3453 = vmatmul.mubr.msk.f32.vlgmr.msra.gmra.mrb[20].mxu1 %vm351_vm6, %v1802_v42 }
 0x383   : > { %3457 = vmatprep.mubr.msk.f32.mxu0 %vm3781_vm1, %v3780_v10  ;;  %3461 = vmatpush3.msra.mxu1 %v1986_v45  ;;  %v2786_v41 = vpop.permute.xlu0 %2785 }
 0x384   : > { %3465 = vmatprep.subr.mxu0 %v3780_v10  ;;  %3462 = vmatprep.mubr.msk.f32.mxu1 %vm3781_vm1, %v3780_v10 }
 0x385   : > { %3458 = vmatmul.mubr.msk.f32.vlgmr.msra.gmra.mrb[20].mxu0 %vm351_vm6, %v1880_v44  ;;  %3470 = vmatprep.subr.mxu1 %v3780_v10  ;;  %v2710_v29 = vpop.permute.xlu1 %2709 }
 0x386   : > { %3466 = vmatpush3.msra.mxu0 %v2062_v46  ;;  %3467 = vmatprep.mubr.msk.f32.mxu0 %vm3781_vm1, %v3780_v10 }
 0x387   : > { %3475 = vmatprep.subr.mxu0 %v3780_v10 }
 0x446   : > { %v4215_v48 = vpop.f32.mrb[14].mxu1 }
 0x447   : > { %v3424_v51 = vpop.f32.mrb[15].mxu1 }
 0x449   : > { %v4217_v52 = vpop.f32.mrb[14].mxu0 }
 0x44a   : > { %v3429_v55 = vpop.f32.mrb[15].mxu0 }
 0x44b   : > { %v4219_v56 = vpop.f32.mrb[16].mxu1 }
 0x44c   : > { %v3434_v58 = vpop.f32.mrb[17].mxu1 }
 0x44d   : > { %v4221_v61 = vpop.f32.mrb[16].mxu0  ;;  %v1315_v58 = vpop.xlane.xlu0 %1314 }
 0x44e   : > { %v3439_v62 = vpop.f32.mrb[17].mxu0 }
 0x451   : > { %v1719_v0 = vpop.f32.mrb[18].mxu1 }
 0x452   : > { %v1957_v1 = vsel %vm4099_vm7, %v1719_v0, 0.0  ;;  %v3444_v4 = vpop.f32.mrb[19].mxu1 }
 0x453   : > { %3463 = vmatmul.mubr.msk.f32.vlgmr.msra.gmra.mrb[22].mxu1 %vm351_vm6, %v1957_v1  ;;  %v1961_v6 = vsel %vm351_vm6, %v1957_v1, 0.0  ;;  %v661_v1 = vsel %vm351_vm6, %v4105_v57, 0.0  ;;  %v1321_v4 = vpop.xlane.xlu0 %1320 }
 0x454   : > { %v1797_v7 = vpop.f32.mrb[18].mxu0  ;;  %3471 = vmatpush3.msra.mxu1 %v2138_v47  ;;  %1962 = vadd.xlane.f32.xlu1 %v1961_v6  ;;  %v2862_v47 = vpop.permute.xlu1 %2861  ;;  %v1325_v6 = vadd.f32 1e-06, %v1315_v58 }
 0x455   : > { %v1958_v8 = vsel %vm4099_vm7, %v1797_v7, 0.0  ;;  %v3449_v9 = vpop.f32.mrb[19].mxu0  ;;  %v1875_v11 = vpop.f32.mrb[20].mxu1  ;;  %3472 = vmatprep.mubr.msk.f32.mxu1 %vm3781_vm1, %v3780_v10  ;;  %3480 = vmatprep.subr.mxu1 %v3780_v10  ;;  %v670_v7 = vsel %vm351_vm6, %v4127_v3, 0.0 }
 0x456   : > { %v1959_v14 = vsel %vm4099_vm7, %v1875_v11, 0.0  ;;  %3468 = vmatmul.mubr.msk.f32.vlgmr.msra.gmra.mrb[22].mxu0 %vm351_vm6, %v1958_v8  ;;  %v1964_v16 = vsel %vm351_vm6, %v1958_v8, 0.0  ;;  %v3454_v17 = vpop.f32.mrb[21].mxu1  ;;  %3614 = vrcp.f32 %v1325_v6  ;;  %v1327_v11 = vadd.f32 1e-06, %v1321_v4 }
 0x457   : > { %3476 = vmatpush3.msra.mxu0 %v2214_v49  ;;  %1965 = vadd.xlane.f32.xlu0 %v1964_v16  ;;  %v1967_v18 = vsel %vm351_vm6, %v1959_v14, 0.0  ;;  %v1324_v9 = vpop.xlane.xlu0 %1323 }
 0x458   : > { %v1953_v21 = vpop.f32.mrb[20].mxu0  ;;  %3473 = vmatmul.mubr.msk.f32.vlgmr.msra.gmra.mrb[24].mxu1 %vm351_vm6, %v1959_v14  ;;  %3477 = vmatprep.mubr.msk.f32.mxu0 %vm3781_vm1, %v3780_v10  ;;  %v1318_v8 = vpop.xlane.xlu1 %1317  ;;  %3616 = vrcp.f32 %v1327_v11  ;;  %v1328_v16 = vadd.f32 1e-06, %v1324_v9 }
 0x459   : > { %v1960_v23 = vsel %vm4099_vm7, %v1953_v21, 0.0  ;;  %v3459_v24 = vpop.f32.mrb[21].mxu0  ;;  %1968 = vadd.xlane.f32.xlu1 %v1967_v18  ;;  %3485 = vmatprep.subr.mxu0 %v3780_v10 }
 0x45a   : > { %3478 = vmatmul.mubr.msk.f32.vlgmr.msra.gmra.mrb[24].mxu0 %vm351_vm6, %v1960_v23  ;;  %v1970_v25 = vsel %vm351_vm6, %v1960_v23, 0.0  ;;  %3482 = vmatprep.mubr.msk.f32.mxu1 %vm3781_vm1, %v3780_v10 }
 0x45b   : > { %1971 = vadd.xlane.f32.xlu0 %v1970_v25  ;;  %3481 = vmatpush3.xpose.msk.msra.mxu1 %vm351_vm6, %v2296_v54 }
 0x45c   : > { %3490 = vmatprep.subr.mxu1 %v3780_v10  ;;  %3487 = vmatprep.mubr.msk.f32.mxu0 %vm3781_vm1, %v3780_v10 }
 0x45e   : > { %3486 = vmatpush3.xpose.msk.msra.mxu0 %vm351_vm6, %v2374_v59  ;;  %3483 = vmatmul.mubr.msk.f32.vlgmr.msra.gmra.mrb[26].mxu1 %vm351_vm6, %v2294_v63 }
 0x45f   : > { %3491 = vmatpush3.xpose.msk.msra.mxu1 %vm351_vm6, %v2452_v13  ;;  %3495 = vmatprep.subr.mxu0 %v3780_v10  ;;  %v1326_v13 = vadd.f32 1e-06, %v1318_v8 }
 0x460   : > { %3492 = vmatprep.mubr.msk.f32.mxu1 %vm3781_vm1, %v3780_v10  ;;  %3500 = vmatprep.subr.mxu1 %v3780_v10  ;;  %v3615_v21 = vpop.eup %3614 }
 0x461   : > { %3488 = vmatmul.mubr.msk.f32.vlgmr.msra.gmra.mrb[26].mxu0 %vm351_vm6, %v2372_v5  ;;  %v664_v5 = vsel %vm351_vm6, %v4114_v60, 0.0  ;;  %3618 = vrcp.f32 %v1326_v13 }
 0x462   : > { %3496 = vmatpush3.xpose.msk.msra.mxu0 %vm351_vm6, %v2530_v22  ;;  %3493 = vmatmul.mubr.msk.f32.vlgmr.msra.gmra.mrb[28].mxu1 %vm351_vm6, %v2450_v26  ;;  %3620 = vrcp.f32 %v1328_v16  ;;  %v1641_v22 = vmul.f32 %v3615_v21, %v4215_v48  ;;  %v3617_v24 = vpop.eup %3616 }
 0x463   : > { %3497 = vmatprep.mubr.msk.f32.mxu0 %vm3781_vm1, %v3780_v10  ;;  %3501 = vmatpush3.msra.mxu1 %v2634_v28  ;;  %v1643_v25 = vmul.f32 %v3617_v24, %v4219_v56 }
 0x464   : > { %3505 = vmatprep.subr.mxu0 %v3780_v10  ;;  %3502 = vmatprep.mubr.msk.f32.mxu1 %vm3781_vm1, %v3780_v10 }
 0x465   : > { %3498 = vmatmul.mubr.msk.f32.vlgmr.msra.gmra.mrb[28].mxu0 %vm351_vm6, %v2528_v27  ;;  %3510 = vmatprep.subr.mxu1 %v3780_v10 }
 0x466   : > { %3506 = vmatpush3.msra.mxu0 %v2710_v29  ;;  %3507 = vmatprep.mubr.msk.f32.mxu0 %vm3781_vm1, %v3780_v10 }
 0x467   : > { %3515 = vmatprep.subr.mxu0 %v3780_v10 }
 0x46b   : > { %v3619_v26 = vpop.eup %3618 }
 0x46c   : > { %v3621_v27 = vpop.eup %3620  ;;  %v1642_v28 = vmul.f32 %v3619_v26, %v4217_v52  ;;  %v3796_v26 = vmov 1983009808  }
 0x46d   : > { %v1644_v29 = vmul.f32 %v3621_v27, %v4221_v61  ;;  %v3006_v27 = vunpack.c.l.s4 %v3796_v26 }
 0x4e1   : > { %v1963_v57 = vpop.xlane.xlu1 %1962 }
 0x4e2   : > { %v1973_v60 = vadd.f32 1e-06, %v1963_v57 }
 0x4e4   : > { %v1966_v14 = vpop.xlane.xlu0 %1965  ;;  %3622 = vrcp.f32 %v1973_v60 }
 0x4e5   : > { %v1974_v17 = vadd.f32 1e-06, %v1966_v14 }
 0x4e6   : > { %v1969_v2 = vpop.xlane.xlu1 %1968 }
 0x4e7   : > { %v1975_v3 = vadd.f32 1e-06, %v1969_v2  ;;  %3624 = vrcp.f32 %v1974_v17 }
 0x4e8   : > { %v1972_v18 = vpop.xlane.xlu0 %1971 }
 0x4e9   : > { %v1976_v23 = vadd.f32 1e-06, %v1972_v18  ;;  %3626 = vrcp.f32 %v1975_v3 }
 0x4eb   : > { %3628 = vrcp.f32 %v1976_v23 }
 0x4ee   : > { %v3623_v48 = vpop.eup %3622 }
 0x526   : > { %v4271_v30 = vpop.f32.mrb[22].mxu1 }
 0x527   : > { %v3464_v31 = vpop.f32.mrb[23].mxu1 }
 0x528   : > { %v3625_v31 = vpop.eup %3624 }
 0x529   : > { %v4273_v32 = vpop.f32.mrb[22].mxu0  ;;  %v3627_v56 = vpop.eup %3626 }
 0x52a   : > { %v3469_v33 = vpop.f32.mrb[23].mxu0 }
 0x52b   : > { %v4275_v34 = vpop.f32.mrb[24].mxu1  ;;  %v2289_v33 = vmul.f32 %v3623_v48, %v4271_v30 }
 0x52c   : > { %v3474_v35 = vpop.f32.mrb[25].mxu1 }
 0x52d   : > { %v4277_v36 = vpop.f32.mrb[24].mxu0  ;;  %v2290_v35 = vmul.f32 %v3625_v31, %v4273_v32 }
 0x52e   : > { %v3479_v37 = vpop.f32.mrb[25].mxu0 }
 0x52f   : > { %v3629_v37 = vpop.eup %3628 }
 0x531   : > { %v2367_v38 = vpop.f32.mrb[26].mxu1 }
 0x532   : > { %v2605_v39 = vsel %vm4099_vm7, %v2367_v38, 0.0  ;;  %v3484_v40 = vpop.f32.mrb[27].mxu1  ;;  %v2291_v38 = vmul.f32 %v3627_v56, %v4275_v34 }
 0x533   : > { %3503 = vmatmul.mubr.msk.f32.vlgmr.msra.gmra.mrb[30].mxu1 %vm351_vm6, %v2605_v39  ;;  %v2609_v42 = vsel %vm351_vm6, %v2605_v39, 0.0  ;;  %v2292_v39 = vmul.f32 %v3629_v37, %v4277_v36  ;;  %v3007_v37 = vunpack.c.0.s8 %v3006_v27 }
 0x534   : > { %v2445_v43 = vpop.f32.mrb[26].mxu0  ;;  %3511 = vmatpush3.msra.mxu1 %v2786_v41  ;;  %2610 = vadd.xlane.f32.xlu1 %v2609_v42 }
 0x535   : > { %v2606_v44 = vsel %vm4099_vm7, %v2445_v43, 0.0  ;;  %v3489_v45 = vpop.f32.mrb[27].mxu0  ;;  %v2523_v46 = vpop.f32.mrb[28].mxu1  ;;  %3512 = vmatprep.mubr.msk.f32.mxu1 %vm3781_vm1, %v3780_v10 }
 0x536   : > { %v2607_v49 = vsel %vm4099_vm7, %v2523_v46, 0.0  ;;  %3508 = vmatmul.mubr.msk.f32.vlgmr.msra.gmra.mrb[30].mxu0 %vm351_vm6, %v2606_v44  ;;  %v2612_v51 = vsel %vm351_vm6, %v2606_v44, 0.0  ;;  %v3494_v54 = vpop.f32.mrb[29].mxu1 }
 0x537   : > { %3516 = vmatpush3.msra.mxu0 %v2862_v47  ;;  %2613 = vadd.xlane.f32.xlu0 %v2612_v51  ;;  %v2615_v55 = vsel %vm351_vm6, %v2607_v49, 0.0 }
 0x538   : > { %v2601_v59 = vpop.f32.mrb[28].mxu0  ;;  %3513 = vmatmul.mubr.msk.f32.vlgmr.msra.gmra.mrb[32].mxu1 %vm351_vm6, %v2607_v49  ;;  %3517 = vmatprep.mubr.msk.f32.mxu0 %vm3781_vm1, %v3780_v10 }
 0x539   : > { %v2608_v62 = vsel %vm4099_vm7, %v2601_v59, 0.0  ;;  %v3499_v63 = vpop.f32.mrb[29].mxu0  ;;  %2616 = vadd.xlane.f32.xlu1 %v2615_v55 }
 0x53a   : > { %3518 = vmatmul.mubr.msk.f32.vlgmr.msra.gmra.mrb[32].mxu0 %vm351_vm6, %v2608_v62  ;;  %v2618_v0 = vsel %vm351_vm6, %v2608_v62, 0.0 }
 0x53b   : > { %2619 = vadd.xlane.f32.xlu0 %v2618_v0 }
 0x53d   : > { %662 = vadd.xlane.f32.xlu1 %v661_v1 }
 0x53f   : > { %665 = vadd.xlane.f32.xlu0 %v664_v5 }
 0x541   : > { %668 = vadd.xlane.f32.xlu1 %v667_v53 }
 0x543   : > { %671 = vadd.xlane.f32.xlu0 %v670_v7 }
 0x552   : > { %2945 = vrot.lane.b32.xlu1 %v1641_v22, %s3793_s22 }
 0x556   : > { %2949 = vrot.lane.b32.xlu1 %v1643_v25, %s3793_s22 }
 0x559   : > { %2947 = vrot.lane.b32.xlu0 %v1642_v28, %s3793_s22 }
 0x55a   : > { %2951 = vrot.lane.b32.xlu1 %v1644_v29, %s3793_s22 }
 0x55d   : > { %2961 = vrot.lane.b32.xlu0 %v2289_v33, %s3794_s7 }
 0x55e   : > { %2963 = vrot.lane.b32.xlu1 %v2290_v35, %s3794_s7  ;;  %v3797_v35 = vmov 1934713408  }
 0x55f   : > { %v3038_v56 = vunpack.c.l.s4 %v3797_v35 }
 0x561   : > { %2965 = vrot.lane.b32.xlu0 %v2291_v38, %s3794_s7 }
 0x562   : > { %2967 = vrot.lane.b32.xlu1 %v2292_v39, %s3794_s7 }
 0x5c1   : > { %v2611_v52 = vpop.xlane.xlu1 %2610 }
 0x5c2   : > { %v2621_v40 = vadd.f32 1e-06, %v2611_v52 }
 0x5c4   : > { %v2614_v61 = vpop.xlane.xlu0 %2613  ;;  %3630 = vrcp.f32 %v2621_v40 }
 0x5c5   : > { %v2622_v42 = vadd.f32 1e-06, %v2614_v61 }
 0x5c6   : > { %v2617_v41 = vpop.xlane.xlu1 %2616 }
 0x5c7   : > { %v2623_v43 = vadd.f32 1e-06, %v2617_v41  ;;  %3632 = vrcp.f32 %v2622_v42  ;;  %v3039_v41 = vunpack.c.0.s8 %v3038_v56 }
 0x5c8   : > { %v2620_v30 = vpop.xlane.xlu0 %2619 }
 0x5c9   : > { %v2624_v32 = vadd.f32 1e-06, %v2620_v30  ;;  %3634 = vrcp.f32 %v2623_v43  ;;  %v3010_v30 = vsub.s32 %v3007_v37, %v4096_v50 }
 0x5ca   : > { %v663_v4 = vpop.xlane.xlu1 %662 }
 0x5cb   : > { %3636 = vrcp.f32 %v2624_v32  ;;  %v673_v8 = vadd.f32 1e-06, %v663_v4 }
 0x5cc   : > { %v666_v53 = vpop.xlane.xlu0 %665 }
 0x5cd   : > { %v674_v57 = vadd.f32 1e-06, %v666_v53  ;;  %3638 = vrcp.f32 %v673_v8 }
 0x5ce   : > { %v3631_v44 = vpop.eup %3630  ;;  %v669_v5 = vpop.xlane.xlu1 %668 }
 0x5cf   : > { %v675_v9 = vadd.f32 1e-06, %v669_v5 }
 0x5d0   : > { %v672_v7 = vpop.xlane.xlu0 %671 }
 0x5d1   : > { %v3633_v47 = vpop.eup %3632  ;;  %3640 = vrcp.f32 %v675_v9  ;;  %v676_v14 = vadd.f32 1e-06, %v672_v7 }
 0x5d2   : > { %v2946_v6 = vpop.permute.xlu1 %2945  ;;  %3642 = vrcp.f32 %v674_v57 }
 0x5d3   : > { %v3635_v54 = vpop.eup %3634  ;;  %3644 = vrcp.f32 %v676_v14 }
 0x5d4   : > { %v2948_v13 = vpop.permute.xlu0 %2947 }
 0x5d5   : > { %v3637_v62 = vpop.eup %3636 }
 0x5d6   : > { %v2950_v11 = vpop.permute.xlu1 %2949 }
 0x5d7   : > { %v3639_v2 = vpop.eup %3638 }
 0x5d8   : > { %v2962_v60 = vpop.permute.xlu0 %2961  ;;  %v993_v3 = vmul.f32 %v3639_v2, %v4159_v12 }
 0x5da   : > { %v2952_v16 = vpop.permute.xlu1 %2951  ;;  %v2989_v48 = vsel %vm351_vm6, %v993_v3, %v2946_v6 }
 0x5db   : > { %v3641_v18 = vpop.eup %3640  ;;  %v2994_v38 = vsel %vm2993_vm8, %v2989_v48, %v2962_v60 }
 0x5dc   : > { %v2966_v21 = vpop.permute.xlu0 %2965  ;;  %v3643_v22 = vpop.eup %3642  ;;  %v995_v23 = vmul.f32 %v3641_v18, %v4163_v19 }
 0x5dd   : > { %v3645_v24 = vpop.eup %3644  ;;  %v994_v28 = vmul.f32 %v3643_v22, %v4161_v15 }
 0x5de   : > { %v2964_v17 = vpop.permute.xlu1 %2963  ;;  %v2991_v31 = vsel %vm351_vm6, %v995_v23, %v2950_v11  ;;  %v996_v33 = vmul.f32 %v3645_v24, %v4165_v20 }
 0x5df   : > { %v2990_v19 = vsel %vm351_vm6, %v994_v28, %v2948_v13  ;;  %v2996_v39 = vsel %vm2993_vm8, %v2991_v31, %v2966_v21 }
 0x5e0   : > { %v2995_v15 = vsel %vm2993_vm8, %v2990_v19, %v2964_v17  ;;  %v2992_v61 = vsel %vm351_vm6, %v996_v33, %v2952_v16 }
 0x5e2   : > { %v2968_v25 = vpop.permute.xlu1 %2967 }
 0x5e3   : > { %v2997_v42 = vsel %vm2993_vm8, %v2992_v61, %v2968_v25 }
 0x606   : > { %v2705_v45 = vpop.f32.mrb[30].mxu1 }
 0x607   : > { %v2937_v46 = vmul.f32 %v3631_v44, %v2705_v45  ;;  %v3504_v34 = vpop.f32.mrb[31].mxu1 }
 0x609   : > { %v2781_v36 = vpop.f32.mrb[30].mxu0  ;;  %2977 = vrot.lane.b32.xlu0 %v2937_v46, %s3795_s10 }
 0x60a   : > { %v2938_v49 = vmul.f32 %v3633_v47, %v2781_v36  ;;  %v3509_v51 = vpop.f32.mrb[31].mxu0  ;;  %v3042_v36 = vsub.s32 %v3039_v41, %v4096_v50 }
 0x60b   : > { %v2857_v55 = vpop.f32.mrb[32].mxu1 }
 0x60c   : > { %v2939_v58 = vmul.f32 %v3635_v54, %v2857_v55  ;;  %v3514_v59 = vpop.f32.mrb[33].mxu1  ;;  %2979 = vrot.lane.b32.xlu1 %v2938_v49, %s3795_s10 }
 0x60d   : > { %v2933_v63 = vpop.f32.mrb[32].mxu0 }
 0x60e   : > { %v2940_v0 = vmul.f32 %v3637_v62, %v2933_v63  ;;  %v3519_v1 = vpop.f32.mrb[33].mxu0  ;;  %2981 = vrot.lane.b32.xlu0 %v2939_v58, %s3795_s10 }
 0x610   : > { %2983 = vrot.lane.b32.xlu1 %v2940_v0, %s3795_s10 }
 0x67b   : > { %v2978_v29 = vpop.permute.xlu0 %2977 }
 0x67c   : > { %v2999_v40 = vsel %vm2998_vm9, %v2994_v38, %v2978_v29 }
 0x67e   : > { %v2980_v12 = vpop.permute.xlu1 %2979 }
 0x67f   : > { %v3000_v45 = vsel %vm2998_vm9, %v2995_v15, %v2980_v12 }
 0x680   : > { %v2982_v52 = vpop.permute.xlu0 %2981 }
 0x681   : > { %v3001_v20 = vsel %vm2998_vm9, %v2996_v39, %v2982_v52 }
 0x682   : > { %v3003_v43 = vcombine.low %v2999_v40, %v3001_v20  ;;  %v3004_v32 = vcombine.high %v2999_v40, %v3001_v20  ;;  %v2984_v44 = vpop.permute.xlu1 %2983 }
 0x683   : > { %v3002_v46 = vsel %vm2998_vm9, %v2997_v42, %v2984_v44 }
 0x684   : > { %v3019_v34 = vcombine.low %v3000_v45, %v3002_v46  ;;  %v3020_v47 = vcombine.high %v3000_v45, %v3002_v46  ;;  %v3011_v49 = vrot.slane %v3003_v43, %v3010_v30  ;;  %v3018_v51 = vrot.slane %v3004_v32, %v3010_v30 }
 0x686   : > { %v3027_v54 = vrot.slane %v3019_v34, %v3010_v30  ;;  %v3034_v55 = vrot.slane %v3020_v47, %v3010_v30 }
 0x688   : > { %v3035_v58 = vcombine.low %v3011_v49, %v3027_v54  ;;  %v3051_v59 = vcombine.low %v3018_v51, %v3034_v55  ;;  %v3052_v62 = vcombine.high %v3018_v51, %v3034_v55  ;;  %v3036_v63 = vcombine.high %v3011_v49, %v3027_v54 }
 0x68a   : > { %v3050_v0 = vrot.slane %v3036_v63, %v3042_v36  ;;  %v3043_v1 = vrot.slane %v3035_v58, %v3042_v36  ;;  %v3059_v4 = vrot.slane %v3051_v59, %v3042_v36  ;;  %v3066_v53 = vrot.slane %v3052_v62, %v3042_v36 }
 0x68c   : > { %3076 = vrot.lane.b32.xlu1 %v3050_v0, %s3783_s9  ;;  %v3067_v5 = vcombine.high %v3043_v1, %v3780_v10  ;;  %v3069_v50 = vcombine.high %v3059_v4, %v3780_v10  ;;  %v3068_v6 = vcombine.high %v3050_v0, %v3780_v10  ;;  %v3070_v7 = vcombine.high %v3066_v53, %v3780_v10 }
 0x68e   : > { %3072 = vrot.lane.b32.xlu0 %v3067_v5, %s3798_s11 }
 0x690   : > { %3084 = vrot.lane.b32.xlu1 %v3069_v50, %s3798_s11 }
 0x692   : > { %3080 = vrot.lane.b32.xlu0 %v3068_v6, %s3782_s8 }
 0x694   : > { %3092 = vrot.lane.b32.xlu1 %v3070_v7, %s3782_s8 }
 0x696   : > { %3088 = vrot.lane.b32.xlu0 %v3066_v53, %s3783_s9 }
 0x6fe   : > { %v3077_v8 = vpop.permute.xlu1 %3076 }
 0x700   : > { %v3073_v9 = vpop.permute.xlu0 %3072 }
 0x701   : > { %v3095_v13 = vsel %vm219_vm0, %v3043_v1, %v3073_v9 }
 0x702   : > { %v3085_v11 = vpop.permute.xlu1 %3084  ;;  %v3097_v10 = vsel %vm3096_vm10, %v3095_v13, %v3077_v8 }
 0x703   : > { %v3100_v14 = vsel %vm219_vm0, %v3059_v4, %v3085_v11 }
 0x704   : > { %v3081_v57 = vpop.permute.xlu0 %3080 }
 0x705   : > { %v3099_v2 = vsel %vm3098_vm11, %v3097_v10, %v3081_v57 }
 0x706   : > { %v3093_v60 = vpop.permute.xlu1 %3092 }
 0x708   : > { %v3089_v16 = vpop.permute.xlu0 %3088 }
 0x709   : > { %v3101_v17 = vsel %vm3096_vm10, %v3100_v14, %v3089_v16 }
 0x70a   : > { %v3102_v18 = vsel %vm3098_vm11, %v3101_v17, %v3093_v60 }
 0x70b   : > { %v3105_v21 = vcombine.low %v3099_v2, %v3102_v18 }
 0x70d   : > { %3107 = vst [vmem:[%s203_s4] sm:$0xff] %v3105_v21 }
 0x70e   : > { %3717 = shalt.err (!%p3714_p7)
}
 0x70f   : > { %s3718_s6 = scalar_lea.hbm %s4348_s26, 128  ;;  %s3722_s22 = scalar_lea.hbm %s4395_s3, 256 }
 0x710   : > { %p3719_p9 = scmp.ne.s32.totalorder %s4348_s26, %s3718_s6  ;;  %p3723_p5 = scmp.lt.u32.totalorder %s4348_s26, %s4395_s3 }
 0x711   : > { %p3724_p2 = scmp.lt.u32.totalorder %s3722_s22, %s3718_s6  ;;  %p3726_p4 = scmp.lt.u32.totalorder %s3718_s6, %s4348_s26 }
 0x712   : > { %p3720_p1 = pnand %p3719_p9, %p3914_p12 }
 0x713   : > { %p3725_p11 = por %p3724_p2, %p3723_p5 }
 0x714   : > { %p3721_p0 = pneg %p3720_p1 }
 0x715   : > { %p3727_p6 = por %p3726_p4, %p3725_p11 }
 0x717   : > { %p3728_p8 = pnand %p3727_p6, %p3721_p0 }
 0x719   : > { %3731 = shalt.err (!%p3728_p8)
}
 0x71a   : > { %3534 = dma.vmem_to_hbm [thread:$0]  (%p3914_p12), %s4350_s25, 128, %s4348_s26, %s3109_s16  }
 0x71b PF: > { %s3135_s11 = sand.u32 1, %s3762_s12   ;;  %p4412_p10 = scmp.ne.s32.totalorder %s4400_s19, 0 }
 0x71c   : > { %p4413_p13 = scmp.ge.s32.totalorder %s3774_s15, 2  ;;  %s3136_s18 = scalar_lea.sflag [#allocation4], %s3135_s11 }
 0x71e   : > { %p3545_p3 = pnand %p4413_p13, %p4412_p10 }
 0x720   : > { %3757 = dma.done.wait (!%p3545_p3), %s3136_s18, 128  }
 0x721   : > { %3759 = vsyncadd (!%p3545_p3), %s3136_s18, 4294967168  ;;  %p17_p7 = scmp.ge.s32.totalorder %s3876_s24, 4   ;;  %s4414_s12 = smov %s3766_s13 }
 0x722   : > { %s4415_s13 = smov %s3770_s14  ;;  %s4416_s14 = smov %s3910_s17 }
 0x723   : > { %s4417_s15 = smov %s3876_s24  ;;  %19 = sbr.rel (!%p17_p7) target bundleno = 6 (0x6), region = 81 }
 0x72a   :  { %3141 = vsyncpa [#allocation3], 1 }
 0x72b   :  { %3143 = vsyncpa [#allocation3 + $0x1], 1 }
 0x72c   :  { %3144 = vsyncpa [#allocation6], 1 }
 0x72d   :  { %3145 = vsyncpa [#allocation4], 1 }
 0x72e   :  { %3147 = vsyncpa [#allocation4 + $0x1], 1 }

</bundles_post_ra>
